<compile_context>
chip_gen: v7x
topology: tpu7x:2x2x1
jax: 0.10.0
libtpu: 0.0.40
codegen_flags: <defaults>
</compile_context>

<pallas_src>
import jax
import jax.numpy as jnp
from jax.experimental import pallas as pl
from jax.experimental.pallas import tpu as pltpu


def _round_up(x, m):
    return ((x + m - 1) // m) * m


def _vmem_budget_bytes():
    """~75% of per-core VMEM (96 MiB on v5e/v6e, 48 MiB on v7x)."""
    try:
        cap = pltpu.get_tpu_info().vmem_capacity_bytes
    except Exception:  # info unavailable -> conservative 64 MiB assumption
        cap = 64 * 1024 * 1024
    return int(cap) * 3 // 4


# ---------------------------------------------------------------------------
# Kernels
# ---------------------------------------------------------------------------
def _logreg_kernel(x_ref, wt_ref, b_ref, o_ref):
    """Single K-panel: in-kernel cast -> MXU matmul (f32 acc) -> f32 bias."""
    acc = jnp.dot(x_ref[...].astype(wt_ref.dtype), wt_ref[...],
                  preferred_element_type=jnp.float32)
    o_ref[...] = (acc + b_ref[...]).astype(o_ref.dtype)


def _logreg_kernel_ksplit(x_ref, wt_ref, b_ref, o_ref, acc_ref):
    """K-tiled: f32 VMEM accumulator, bias add + store on the last K step."""
    k = pl.program_id(2)

    @pl.when(k == 0)
    def _():
        acc_ref[...] = jnp.zeros_like(acc_ref)

    acc_ref[...] += jnp.dot(x_ref[...].astype(wt_ref.dtype), wt_ref[...],
                            preferred_element_type=jnp.float32)

    @pl.when(k == pl.num_programs(2) - 1)
    def _():
        o_ref[...] = (acc_ref[...] + b_ref[...]).astype(o_ref.dtype)


# ---------------------------------------------------------------------------
# One-time parameter preparation (off the hot path)
# ---------------------------------------------------------------------------
def prepare_logreg_params(weight, bias, compute_dtype=jnp.bfloat16):
    """weight (nb_classes, ft_in) -> W^T padded to 128 lanes, compute dtype.

    Bias stays f32: the add happens on the f32 MXU output on the VPU (safe on
    v5e which has no bf16 VPU).
    """
    nb_classes, ft_in = weight.shape
    c_pad = _round_up(nb_classes, 128)
    wt_padded = jnp.zeros((ft_in, c_pad), dtype=compute_dtype)
    wt_padded = wt_padded.at[:, :nb_classes].set(weight.T.astype(compute_dtype))
    b_padded = jnp.zeros((1, c_pad), dtype=jnp.float32)
    b_padded = b_padded.at[:, :nb_classes].set(bias.astype(jnp.float32))
    return wt_padded, b_padded


# ---------------------------------------------------------------------------
# Forward
# ---------------------------------------------------------------------------
def logreg_forward(seq, wt_padded, b_padded, nb_classes, out_dtype=None):
    """seq (B, ft_in) -> logits (B, nb_classes).

    wt_padded: (ft_in, c_pad) in the MXU compute dtype; b_padded: (1, c_pad)
    f32 (both from prepare_logreg_params).  out_dtype defaults to seq.dtype;
    pass jnp.bfloat16 to halve logits writeback when the consumer tolerates it.
    """
    B, ft_in = seq.shape
    k_dim, c_pad = wt_padded.shape
    assert k_dim == ft_in, "weight / activation feature-dim mismatch"
    if out_dtype is None:
        out_dtype = seq.dtype

    x_bytes = jnp.dtype(seq.dtype).itemsize
    w_bytes = jnp.dtype(wt_padded.dtype).itemsize
    out_bytes = jnp.dtype(out_dtype).itemsize

    vmem_budget = _vmem_budget_bytes()

    # ---- tile selection against the per-generation VMEM budget ------------
    tile_n = c_pad if c_pad <= 1024 else 1024   # lane-dense (multiple of 128)
    tile_k = ft_in

    def footprint(tm, tn, tk, ksplit):
        return (2 * tm * tk * x_bytes           # X row-tile (double-buffered)
                + 2 * tk * tn * w_bytes         # W panel (conservatively x2)
                + 2 * tn * 4                    # bias
                + 2 * tm * tn * out_bytes       # output tile (double-buffered)
                + (tm * tn * 4 if ksplit else 0))   # f32 accumulator scratch

    row_cap = 1024 if vmem_budget >= 64 * 1024 * 1024 else 512
    if B <= 32:
        tile_m = B                              # full dim -> always legal
    else:
        # >= 2 row-tiles so v7x's two TensorCores both get work.
        tile_m = min(row_cap, _round_up(pl.cdiv(B, 2), 16))

    # Shrink the row tile, then the class tile, until the working set fits.
    while tile_m > 16 and footprint(tile_m, tile_n, tile_k, False) > vmem_budget:
        tile_m = max(16, _round_up(tile_m // 2, 16))
    while tile_n > 128 and footprint(tile_m, tile_n, tile_k, False) > vmem_budget:
        tile_n = max(128, _round_up(tile_n // 2, 128))

    # Last resort: tile the contraction (huge ft_in vs v7x's 64 MiB VMEM).
    # Only exact 128-multiple divisors of ft_in are used so no out-of-bounds
    # K data ever reaches the accumulator.
    ksplit = False
    if footprint(tile_m, tile_n, tile_k, False) > vmem_budget and ft_in % 128 == 0:
        divisors = [d for d in range(128, ft_in, 128) if ft_in % d == 0]
        fitting = [d for d in divisors
                   if footprint(tile_m, tile_n, d, True) <= vmem_budget]
        if divisors:
            tile_k = max(fitting) if fitting else min(divisors)
            ksplit = True

    grid_m = pl.cdiv(B, tile_m)
    grid_n = pl.cdiv(c_pad, tile_n)
    grid_k = pl.cdiv(ft_in, tile_k)

    x_spec = pl.BlockSpec((tile_m, tile_k), lambda m, n, k: (m, k))
    w_spec = pl.BlockSpec((tile_k, tile_n), lambda m, n, k: (k, n))
    b_spec = pl.BlockSpec((1, tile_n), lambda m, n, k: (0, n))
    o_spec = pl.BlockSpec((tile_m, tile_n), lambda m, n, k: (m, n))

    if ksplit:
        kernel = _logreg_kernel_ksplit
        scratch = [pltpu.VMEM((tile_m, tile_n), jnp.float32)]
    else:
        kernel = _logreg_kernel
        scratch = []

    cost = pl.CostEstimate(
        flops=2 * B * ft_in * c_pad,
        transcendentals=0,
        bytes_accessed=(B * ft_in * x_bytes          # X read once (no extra pass)
                        + ft_in * c_pad * w_bytes    # W resident
                        + c_pad * 4                  # bias
                        + B * c_pad * out_bytes),    # logits writeback
    )

    out_padded = pl.pallas_call(
        kernel,
        out_shape=jax.ShapeDtypeStruct((B, c_pad), out_dtype),
        grid_spec=pltpu.PrefetchScalarGridSpec(
            num_scalar_prefetch=0,
            grid=(grid_m, grid_n, grid_k),
            in_specs=[x_spec, w_spec, b_spec],
            out_specs=o_spec,
            scratch_shapes=scratch,
        ),
        compiler_params=pltpu.CompilerParams(
            # (m, n) tiles are independent -> megacore sharding on v7x;
            # K is a reduction -> last + arbitrary.
            dimension_semantics=("parallel", "parallel", "arbitrary"),
            vmem_limit_bytes=vmem_budget,
        ),
        cost_estimate=cost,
    )(seq, wt_padded, b_padded)

    # Strip the class padding (batch dim was never padded).
    return out_padded[:, :nb_classes]


def init_logreg_params(key, ft_in, nb_classes, dtype=jnp.float32):
    """Deterministic xavier_uniform_ weight, zero bias (matches weights_init)."""
    bound = (6.0 / (ft_in + nb_classes)) ** 0.5
    weight = jax.random.uniform(
        key, (nb_classes, ft_in), dtype=dtype, minval=-bound, maxval=bound)
    bias = jnp.zeros((nb_classes,), dtype=dtype)
    return weight, bias


if __name__ == "__main__":
    key = jax.random.PRNGKey(0)
    k_x, k_w = jax.random.split(key)

    batch, ft_in, nb_classes = 8, 32, 16
    seq = jax.random.normal(k_x, (batch, ft_in), dtype=jnp.float32)
    weight, bias = init_logreg_params(k_w, ft_in, nb_classes)

    # Fast path: bf16 MXU operands (X cast in-kernel), f32 accumulation + bias.
    wt_bf16, b_pad = prepare_logreg_params(weight, bias,
                                           compute_dtype=jnp.bfloat16)
    out_bf16 = jax.block_until_ready(
        logreg_forward(seq, wt_bf16, b_pad, nb_classes))
    ref_bf16 = (seq.astype(jnp.bfloat16).astype(jnp.float32)
                @ weight.T.astype(jnp.bfloat16).astype(jnp.float32)) + bias
    assert out_bf16.shape == (batch, nb_classes)
    assert out_bf16.dtype == seq.dtype
    assert jnp.allclose(out_bf16, ref_bf16, atol=1e-3, rtol=1e-3)

    # Reduced-writeback variant: bf16 logits output.
    out_b16o = jax.block_until_ready(
        logreg_forward(seq, wt_bf16, b_pad, nb_classes,
                       out_dtype=jnp.bfloat16))
    assert out_b16o.dtype == jnp.bfloat16
    assert jnp.allclose(out_b16o.astype(jnp.float32), ref_bf16,
                        atol=2e-2, rtol=2e-2)

    # Full-precision path (f32 end-to-end, e.g. for v5e).
    wt_f32, b_pad32 = prepare_logreg_params(weight, bias,
                                            compute_dtype=jnp.float32)
    out_f32 = jax.block_until_ready(
        logreg_forward(seq, wt_f32, b_pad32, nb_classes))
    ref_f32 = seq @ weight.T + bias
    assert out_f32.shape == (batch, nb_classes)
    assert jnp.allclose(out_f32, ref_f32, atol=1e-4, rtol=1e-4)

    print("KERNEL_OK")
</pallas_src>

<mosaic_0001>
module attributes {stable_mosaic.version = 11 : i64} {
  func.func @_logreg_kernel(%arg0: i32, %arg1: i32, %arg2: i32, %arg3: memref<8x32xf32, #tpu.memory_space<vmem>>, %arg4: memref<32x128xbf16, #tpu.memory_space<vmem>>, %arg5: memref<1x128xf32, #tpu.memory_space<vmem>>, %arg6: memref<8x128xf32, #tpu.memory_space<vmem>>) attributes {dimension_semantics = [#tpu.dimension_semantics<parallel>, #tpu.dimension_semantics<parallel>, #tpu.dimension_semantics<arbitrary>], iteration_bounds = array<i64: 1, 1, 1>, scalar_prefetch = 0 : i64, scratch_operands = 0 : i64, tpu.core_type = #tpu.core_type<tc>, window_params = [{transform_indices = @transform_0, window_bounds = array<i64: 8, 32>}, {transform_indices = @transform_1, window_bounds = array<i64: 32, 128>}, {transform_indices = @transform_2, window_bounds = array<i64: 1, 128>}, {transform_indices = @transform_3, window_bounds = array<i64: 8, 128>}]} {
    %c0 = arith.constant 0 : index
    %c0_0 = arith.constant 0 : index
    %0 = vector.load %arg3[%c0, %c0_0] : memref<8x32xf32, #tpu.memory_space<vmem>>, vector<8x32xf32>
    %1 = arith.truncf %0 : vector<8x32xf32> to vector<8x32xbf16>
    %c0_1 = arith.constant 0 : index
    %c0_2 = arith.constant 0 : index
    %2 = vector.load %arg4[%c0_1, %c0_2] : memref<32x128xbf16, #tpu.memory_space<vmem>>, vector<32x128xbf16>
    %cst = arith.constant dense<0.000000e+00> : vector<8x128xf32>
    %3 = tpu.matmul %1, %2, %cst {dimension_numbers = #tpu.dot_dimension_numbers<[1], [0], [0], [1], [0, 0, 1, 1], [], []>} : vector<8x32xbf16>, vector<32x128xbf16>, vector<8x128xf32> -> vector<8x128xf32>
    %c0_3 = arith.constant 0 : index
    %c0_4 = arith.constant 0 : index
    %4 = vector.load %arg5[%c0_3, %c0_4] : memref<1x128xf32, #tpu.memory_space<vmem>>, vector<1x128xf32>
    %5 = vector.broadcast %4 : vector<1x128xf32> to vector<8x128xf32>
    %6 = arith.addf %3, %5 : vector<8x128xf32>
    %c0_5 = arith.constant 0 : index
    %c0_6 = arith.constant 0 : index
    %7 = vector.load %arg6[%c0_5, %c0_6] : memref<8x128xf32, #tpu.memory_space<vmem>>, vector<8x128xf32>
    tpu.vector_store %arg6[%c0_5, %c0_6], %6 {strides = array<i32>} : memref<8x128xf32, #tpu.memory_space<vmem>>, vector<8x128xf32>,
    return
  }
  func.func @transform_0(%arg0: i32, %arg1: i32, %arg2: i32) -> (i32, i32) {
    %c0_i32 = arith.constant 0 : i32
    return %arg0, %arg2 : i32, i32
  }
  func.func @transform_1(%arg0: i32, %arg1: i32, %arg2: i32) -> (i32, i32) {
    %c0_i32 = arith.constant 0 : i32
    return %arg2, %arg1 : i32, i32
  }
  func.func @transform_2(%arg0: i32, %arg1: i32, %arg2: i32) -> (i32, i32) {
    %c0_i32 = arith.constant 0 : i32
    %c0_i32_0 = arith.constant 0 : i32
    return %c0_i32, %arg1 : i32, i32
  }
  func.func @transform_3(%arg0: i32, %arg1: i32, %arg2: i32) -> (i32, i32) {
    %c0_i32 = arith.constant 0 : i32
    return %arg0, %arg1 : i32, i32
  }
}

</mosaic_0001>

<bundles_post_ra>
// kernel: tpu_custom_call.1
= control target key start
LH: loop header
LB: loop body
LE: loop exit
PB: predicated region body
PF: predicated region fallthrough
CT: control target
= control target key end

     0   :  { %8 = vsyncpa [#allocation3], 0  ;;  %s297_s0 = inlined_call_operand.hbm [shape: f32[8,32], index: 0, kind: input, shape index: {}]   ;;  %s298_s1 = inlined_call_operand.hbm [shape: bf16[32,128], index: 1, kind: input, shape index: {}]   ;;  %s299_s2 = inlined_call_operand.vmem [shape: f32[1,128], index: 2, kind: input, shape index: {}]   ;;  %s300_s3 = inlined_call_operand.hbm [shape: f32[8,128], index: 3, kind: output, shape index: {}]  }
   0x1   :  { %9 = vsyncpa [#allocation6], 0 }
   0x2   :  { %10 = vsyncpa [#allocation4], 0  ;;  %s224_s12 = smov [#allocation2]   ;;  %s225_s14 = smov [#allocation5]  }
   0x3   :  { %s17_s13 = sshll.u32 %s224_s12, 4  ;;  %s26_s15 = sshll.u32 %s225_s14, 4  ;;  %s18_s13 = int_to_ptr.vmem [resolvable:$true] %s17_s13  ;;  %s251_s15 = int_to_ptr.vmem [resolvable:$true] %s26_s15 }
   0x4   :  { %s152_s18 = scalar_lea.hbm %s297_s0, 128 }
   0x5   :  { %p153_p0 = scmp.ne.s32.totalorder %s297_s0, %s152_s18  ;;  %p156_p1 = scmp.lt.u32.totalorder %s152_s18, %s297_s0 }
   0x7   :  { %p158_p2 = pnand %p156_p1, %p153_p0 }
   0x9   :  { %161 = shalt.err (!%p158_p2)
}
   0xa   :  { %s162_s23 = scalar_lea.vmem %s18_s13, 128  ;;  %p167_p4 = scmp.lt.s32.totalorder %s18_s13, %s18_s13 }
   0xb   :  { %p163_p3 = scmp.ne.s32.totalorder %s18_s13, %s162_s23  ;;  %p168_p5 = scmp.lt.s32.totalorder %s162_s23, %s162_s23 }
   0xd   :  { %p169_p6 = por %p168_p5, %p167_p4 }
   0xf   :  { %p170_p7 = pnand %p169_p6, %p163_p3 }
  0x11   :  { %173 = shalt.err (!%p170_p7)
}
  0x12   :  { %20 = dma.hbm_to_vmem [thread:$0]  %s297_s0, 128, %s18_s13, [#allocation3]  }
  0x13   :  { %s174_s28 = scalar_lea.hbm %s298_s1, 256 }
  0x14   :  { %p175_p8 = scmp.ne.s32.totalorder %s298_s1, %s174_s28  ;;  %p178_p9 = scmp.lt.u32.totalorder %s174_s28, %s298_s1 }
  0x16   :  { %p180_p10 = pnand %p178_p9, %p175_p8 }
  0x18   :  { %183 = shalt.err (!%p180_p10)
}
  0x19   :  { %s184_s6 = scalar_lea.vmem %s251_s15, 256  ;;  %p189_p12 = scmp.lt.s32.totalorder %s251_s15, %s251_s15 }
  0x1a   :  { %p185_p11 = scmp.ne.s32.totalorder %s251_s15, %s184_s6  ;;  %p190_p13 = scmp.lt.s32.totalorder %s184_s6, %s184_s6 }
  0x1c   :  { %p191_p0 = por %p190_p13, %p189_p12 }
  0x1e   :  { %p192_p1 = pnand %p191_p0, %p185_p11 }
  0x20   :  { %195 = shalt.err (!%p192_p1)
}
  0x21   :  { %s226_s0 = smov 64   ;;  %s227_s7 = smov 4  }
  0x22   :  { %32 = dma.hbm_to_vmem [thread:$0]  %s298_s1, 256, %s251_s15, [#allocation6], %s226_s0, %s226_s0, %s227_s7  }
  0x23   :  { %218 = dma.done.wait [#allocation3], 128  }
  0x24   :  { %219 = vsyncadd [#allocation3], 4294967168 }
  0x25   :  { %220 = dma.done.wait [#allocation6], 256  }
  0x26   :  { %221 = vsyncadd [#allocation6], 4294967040  ;;  %v228_v0 = vmov 0.0   ;;  %vm229_vm0 = vmmov 0   ;;  %v150_v1 = vld [vmem:[#allocation5] sm:$0xff]   ;;  %v151_v2 = vld [vmem:[#allocation5 + $0x8] sm:$0xff]  }
  0x27   :  { %135 = vmatprep.subr.bf16.mxu0 %v228_v0  ;;  %139 = vmatprep.mubr.msk.bf16.mxu0 %vm229_vm0, %v228_v0  ;;  %v42_v3 = vld [vmem:[#allocation2] sm:$0xff]  ;;  %vm67_vm1 = vcmask 261120   ;;  %s230_s1 = smov [#allocation7]  }
  0x28   :  { %136 = vmatpush3.bf16.msra.mxu0 %v150_v1  ;;  %v43_v4 = vpack.c.bf16 %v42_v3, %v42_v3  ;;  %v128_v5 = vld [vmem:[%s299_s2] ss:$0 sm:$0xff]  ;;  %s118_s12 = sshll.u32 %s230_s1, 4  ;;  %s119_s12 = int_to_ptr.vmem [resolvable:$true] %s118_s12 }
  0x29   :  { %137 = vmatprep.subr.bf16.mxu0 %v228_v0  ;;  %s196_s13 = scalar_lea.vmem %s119_s12, 128  ;;  %p201_p3 = scmp.lt.s32.totalorder %s119_s12, %s119_s12 }
  0x2a   :  { %p197_p2 = scmp.ne.s32.totalorder %s119_s12, %s196_s13  ;;  %p202_p4 = scmp.lt.s32.totalorder %s196_s13, %s196_s13 }
  0x2c   :  { %138 = vmatpush3.bf16.msra.mxu0 %v151_v2  ;;  %p203_p5 = por %p202_p4, %p201_p3 }
  0x2e   :  { %p204_p6 = pnand %p203_p5, %p197_p2 }
  0x2f   :  { %140 = vmatmul.mubr.msk.bf16.vlgmr.msra.gmra.mrb[0].mxu0 %vm67_vm1, %v43_v4 }
 0x102   :  { %v105_v6 = vpop.f32.mrb[0].mxu0 }
 0x103   :  { %v106_v7 = vadd.f32 %v128_v5, %v105_v6  ;;  %v141_v8 = vpop.f32.mrb[1].mxu0 }
 0x104   :  { %v108_v9 = vpop.f32.mrb[2].mxu0 }
 0x105   :  { %111 = vst [vmem:[#allocation7] sm:$0xff] %v106_v7  ;;  %v142_v10 = vpop.f32.mrb[3].mxu0 }
 0x106   :  { %207 = shalt.err (!%p204_p6)
}
 0x107   :  { %s208_s2 = scalar_lea.hbm %s300_s3, 128 }
 0x108   :  { %p209_p7 = scmp.ne.s32.totalorder %s300_s3, %s208_s2  ;;  %p212_p8 = scmp.lt.u32.totalorder %s208_s2, %s300_s3 }
 0x10a   :  { %p214_p9 = pnand %p212_p8, %p209_p7 }
 0x10c   :  { %217 = shalt.err (!%p214_p9)
}
 0x10d   :  { %121 = dma.vmem_to_hbm [thread:$0]  %s119_s12, 128, %s300_s3, [#allocation4]  }
 0x10e   :  { %222 = dma.done.wait [#allocation4], 128  }
 0x10f   :  { %223 = vsyncadd [#allocation4], 4294967168 }
 0x110   :  { %125 = vsyncpa [#allocation3], 1 }
 0x111   :  { %126 = vsyncpa [#allocation6], 1 }
 0x112   :  { %127 = vsyncpa [#allocation4], 1 }

</bundles_post_ra>
